<compile_context>
chip_gen: v5e
topology: v5e:2x2
jax: 0.10.0
libtpu: 0.0.40
codegen_flags: <defaults>
</compile_context>

<pallas_src>
import functools

import jax
import jax.numpy as jnp
from jax import lax
from jax.experimental import pallas as pl
from jax.experimental.pallas import tpu as pltpu


def _round_up(v, m):
    return ((v + m - 1) // m) * m


def _cdiv(a, b):
    return (a + b - 1) // b


# ----------------------------- Fused kernel ---------------------------------

def _gcn_kernel(adj_ref, feat_ref, wt_ref, out_ref, s_acc, *,
                n_src, tile_k, x_resident, apply_wt, mask_k):
    """One (dst-tile, k-tile) grid step of  out = A @ feat [@ W^T_with_bias].

    adj_ref : (tile_m, tile_k)        bf16 adjacency block, A[dst, src]
    feat_ref: (tile_k, W) / (Nk, W)   bf16 features (streamed or resident)
    wt_ref  : (W, F_out_p) f32        W^T with bias row folded in (or dummy)
    out_ref : (tile_m, F_out_p) f32   lane-dense output block
    s_acc   : (tile_m, W) f32         accumulator for adj @ feat
    """
    k = pl.program_id(1)

    @pl.when(k == 0)
    def _():
        s_acc[...] = jnp.zeros_like(s_acc)

    a = adj_ref[...]
    if mask_k:
        # Ragged last k-tile: zero source columns >= n_src so undefined values
        # that Pallas exposes past the (unpadded) adjacency never reach the
        # MXU.  Cheap VPU work; only emitted when N % tile_k != 0.
        col = lax.broadcasted_iota(jnp.int32, a.shape, 1) + k * tile_k
        a = jnp.where(col < n_src, a, jnp.zeros_like(a))

    if x_resident:
        start = pl.multiple_of(k * tile_k, tile_k)
        feat = feat_ref[pl.ds(start, tile_k), :]
    else:
        feat = feat_ref[...]

    s_acc[...] += jnp.dot(a, feat, preferred_element_type=jnp.float32)

    @pl.when(k == pl.num_programs(1) - 1)
    def _():
        if apply_wt:
            out_ref[...] = jnp.dot(
                s_acc[...], wt_ref[...],
                preferred_element_type=jnp.float32).astype(out_ref.dtype)
        else:
            out_ref[...] = s_acc[...].astype(out_ref.dtype)


# ------------------------------- Wrapper -------------------------------------

@functools.partial(jax.jit, static_argnames=("tile_m", "tile_k"))
def gcn_conv_dgl(x, weight, bias, adj, *, tile_m=512, tile_k=1024):
    """out = adj @ (x @ weight.T + bias), single fused Pallas TPU kernel.

    x:      (N, F_in)   float32 node features
    weight: (F_out, F_in)  nn.Linear weight (PyTorch layout)
    bias:   (F_out,)
    adj:    (N, N) dense weighted adjacency, adj[dst, src] = edge weight
    """
    n, f_in = x.shape
    f_out = weight.shape[0]
    f32 = jnp.float32
    stream_dtype = jnp.bfloat16  # dominant operands in bf16; accumulate in f32

    # ---- Tile selection ------------------------------------------------
    tile_m_eff = min(tile_m, _round_up(n, 8))
    if _cdiv(n, tile_m_eff) < 2 and n >= 16:
        # v7x has 2 TensorCores; the 'parallel' dst axis shards across them,
        # so make sure small graphs still produce >= 2 destination tiles.
        tile_m_eff = _round_up(_cdiv(n, 2), 8)
    tile_k_eff = min(tile_k, _round_up(n, 128))
    n_k_pad = _round_up(n, tile_k_eff)

    # ---- Contraction width: min(F_in_p(+ones), F_out_p) -----------------
    f_in_p = _round_up(f_in + 1, 128)   # +1 lane carries the bias ones-column
    f_out_p = _round_up(f_out, 128)
    apply_wt = f_in_p <= f_out_p        # reorder (A@x)@W^T only if it is narrower

    if apply_wt:
        width = f_in_p
        # feat = [x | 1 | 0...]  (bf16),  wt = [[W^T], [bias], [0...]]  (f32)
        feat_p = jnp.zeros((n_k_pad, width), stream_dtype)
        feat_p = feat_p.at[:n, :f_in].set(x.astype(stream_dtype))
        feat_p = feat_p.at[:n, f_in].set(jnp.asarray(1.0, stream_dtype))
        wt_p = jnp.zeros((width, f_out_p), f32)
        wt_p = wt_p.at[:f_in, :f_out].set(weight.T.astype(f32))
        wt_p = wt_p.at[f_in, :f_out].set(bias.astype(f32))
    else:
        width = f_out_p
        # Precompute h = x W^T + b once (tiny GEMM) and stream it instead.
        h = x.astype(f32) @ weight.T.astype(f32) + bias.astype(f32)
        feat_p = jnp.zeros((n_k_pad, width), stream_dtype)
        feat_p = feat_p.at[:n, :f_out].set(h.astype(stream_dtype))
        wt_p = jnp.zeros((8, 128), f32)  # dummy, never read by the kernel

    # No HBM round trip for the N x N adjacency: only a dtype cast.
    adj_s = adj.astype(stream_dtype)

    grid = (_cdiv(n, tile_m_eff), _cdiv(n, tile_k_eff))
    mask_k = (n % tile_k_eff) != 0

    # ---- Resident feature operand & VMEM budget --------------------------
    x_res_bytes = n_k_pad * width * 2
    x_resident = x_res_bytes <= (16 << 20)   # fits easily even on v7x (64 MiB)
    if x_resident:
        feat_spec = pl.BlockSpec((n_k_pad, width), lambda i, k: (0, 0))
        feat_buf_bytes = 2 * x_res_bytes
    else:
        feat_spec = pl.BlockSpec((tile_k_eff, width), lambda i, k: (k, 0))
        feat_buf_bytes = 2 * tile_k_eff * width * 2

    wt_shape = wt_p.shape
    vmem_bytes = (2 * tile_m_eff * tile_k_eff * 2        # adj, double-buffered
                  + feat_buf_bytes                       # features
                  + 2 * wt_shape[0] * wt_shape[1] * 4    # W^T (resident)
                  + 2 * tile_m_eff * f_out_p * 4         # out, double-buffered
                  + tile_m_eff * width * 4)              # s_acc scratch
    vmem_limit = int(min(max(vmem_bytes + (4 << 20), 32 << 20), 56 << 20))

    kernel = functools.partial(
        _gcn_kernel, n_src=n, tile_k=tile_k_eff,
        x_resident=x_resident, apply_wt=apply_wt, mask_k=mask_k)

    cost = pl.CostEstimate(
        flops=2 * n * n * width + (2 * n * width * f_out_p if apply_wt else 0),
        transcendentals=0,
        bytes_accessed=(n * n * 2 + n_k_pad * width * 2
                        + wt_shape[0] * wt_shape[1] * 4 + n * f_out_p * 4))

    out_p = pl.pallas_call(
        kernel,
        out_shape=jax.ShapeDtypeStruct((n, f_out_p), f32),
        grid_spec=pltpu.PrefetchScalarGridSpec(
            num_scalar_prefetch=0,
            grid=grid,
            in_specs=[
                pl.BlockSpec((tile_m_eff, tile_k_eff), lambda i, k: (i, k)),
                feat_spec,
                pl.BlockSpec(wt_shape, lambda i, k: (0, 0)),
            ],
            out_specs=pl.BlockSpec((tile_m_eff, f_out_p), lambda i, k: (i, 0)),
            scratch_shapes=[pltpu.VMEM((tile_m_eff, width), f32)],
        ),
        compiler_params=pltpu.CompilerParams(
            dimension_semantics=("parallel", "arbitrary"),
            vmem_limit_bytes=vmem_limit),
        cost_estimate=cost,
    )(adj_s, feat_p, wt_p)

    return out_p[:, :f_out]


# -------------------------------- Main ----------------------------------------

if __name__ == "__main__":
    key = jax.random.PRNGKey(0)
    k_x, k_w, k_b, k_a, k_m = jax.random.split(key, 5)

    N = 32          # number of graph nodes
    F_IN = 16       # input_size
    F_OUT = 32      # output_size

    # Node features.
    x = jax.random.normal(k_x, (N, F_IN), dtype=jnp.float32)

    # nn.Linear(F_IN, F_OUT) parameters.
    bound = 1.0 / (F_IN ** 0.5)
    weight = jax.random.uniform(k_w, (F_OUT, F_IN), jnp.float32, -bound, bound)
    bias = jax.random.uniform(k_b, (F_OUT,), jnp.float32, -bound, bound)

    # Weighted adjacency: A[dst, src] = edge weight (~30% edges).
    edge_w = jax.random.uniform(k_a, (N, N), jnp.float32)
    mask = (jax.random.uniform(k_m, (N, N)) < 0.3).astype(jnp.float32)
    adj = edge_w * mask

    out = gcn_conv_dgl(x, weight, bias, adj)
    out = jax.block_until_ready(out)
    assert out.shape == (N, F_OUT)

    # Reference (plain JAX) with the same bf16 quantization of adj / x that the
    # kernel streams; tolerance loosened accordingly.
    adj_q = adj.astype(jnp.bfloat16).astype(jnp.float32)
    x_q = x.astype(jnp.bfloat16).astype(jnp.float32)
    ref = adj_q @ (x_q @ weight.T + bias)
    assert jnp.allclose(out, ref, atol=1e-2, rtol=1e-2)

    print("KERNEL_OK")
</pallas_src>

<mosaic_0001>
module attributes {stable_mosaic.version = 11 : i64} {
  func.func @_gcn_kernel(%arg0: i32, %arg1: i32, %arg2: memref<16x128xbf16, #tpu.memory_space<vmem>>, %arg3: memref<128x128xbf16, #tpu.memory_space<vmem>>, %arg4: memref<128x128xf32, #tpu.memory_space<vmem>>, %arg5: memref<16x128xf32, #tpu.memory_space<vmem>>, %arg6: memref<16x128xf32, #tpu.memory_space<vmem>>) attributes {dimension_semantics = [#tpu.dimension_semantics<parallel>, #tpu.dimension_semantics<arbitrary>], iteration_bounds = array<i64: 2, 1>, scalar_prefetch = 0 : i64, scratch_operands = 1 : i64, tpu.core_type = #tpu.core_type<tc>, window_params = [{transform_indices = @transform_0, window_bounds = array<i64: 16, 128>}, {pipeline_mode = #tpu.pipeline_mode<synchronous>, transform_indices = @transform_1, window_bounds = array<i64: 128, 128>}, {pipeline_mode = #tpu.pipeline_mode<synchronous>, transform_indices = @transform_2, window_bounds = array<i64: 128, 128>}, {transform_indices = @transform_3, window_bounds = array<i64: 16, 128>}]} {
    %c0_i32 = arith.constant 0 : i32
    %0 = arith.cmpi eq, %arg1, %c0_i32 : i32
    %1 = arith.extui %0 : i1 to i32
    %c0_i32_0 = arith.constant 0 : i32
    %2 = arith.cmpi ne, %1, %c0_i32_0 : i32
    scf.if %2 {
      %cst_11 = arith.constant 0.000000e+00 : f32
      %23 = vector.broadcast %cst_11 : f32 to vector<16x128xf32>
      %c0_12 = arith.constant 0 : index
      %c0_13 = arith.constant 0 : index
      %24 = vector.load %arg6[%c0_12, %c0_13] : memref<16x128xf32, #tpu.memory_space<vmem>>, vector<16x128xf32>
      tpu.vector_store %arg6[%c0_12, %c0_13], %23 {strides = array<i32>} : memref<16x128xf32, #tpu.memory_space<vmem>>, vector<16x128xf32>,
    } else {
    }
    %c0 = arith.constant 0 : index
    %c0_1 = arith.constant 0 : index
    %3 = vector.load %arg2[%c0, %c0_1] : memref<16x128xbf16, #tpu.memory_space<vmem>>, vector<16x128xbf16>
    %4 = tpu.iota {dimensions = array<i32: 1>} : vector<16x128xi32>
    %c128_i32 = arith.constant 128 : i32
    %5 = arith.muli %arg1, %c128_i32 : i32
    %6 = vector.broadcast %5 : i32 to vector<16x128xi32>
    %7 = arith.addi %4, %6 : vector<16x128xi32>
    %c32_i32 = arith.constant 32 : i32
    %8 = vector.broadcast %c32_i32 : i32 to vector<16x128xi32>
    %9 = arith.cmpi slt, %7, %8 : vector<16x128xi32>
    %cst = arith.constant 0.000000e+00 : bf16
    %10 = vector.broadcast %cst : bf16 to vector<16x128xbf16>
    %11 = arith.select %9, %3, %10 : vector<16x128xi1>, vector<16x128xbf16>
    %c128_i32_2 = arith.constant 128 : i32
    %12 = arith.muli %arg1, %c128_i32_2 : i32
    %13 = tpu.assume_multiple %12, 128 : i32
    %14 = arith.index_cast %13 : i32 to index
    %c0_3 = arith.constant 0 : index
    %15 = vector.load %arg3[%14, %c0_3] : memref<128x128xbf16, #tpu.memory_space<vmem>>, vector<128x128xbf16>
    %c0_4 = arith.constant 0 : index
    %c0_5 = arith.constant 0 : index
    %16 = vector.load %arg6[%c0_4, %c0_5] : memref<16x128xf32, #tpu.memory_space<vmem>>, vector<16x128xf32>
    %cst_6 = arith.constant dense<0.000000e+00> : vector<16x128xf32>
    %17 = tpu.matmul %11, %15, %cst_6 {dimension_numbers = #tpu.dot_dimension_numbers<[1], [0], [0], [1], [0, 0, 1, 1], [], []>} : vector<16x128xbf16>, vector<128x128xbf16>, vector<16x128xf32> -> vector<16x128xf32>
    %18 = arith.addf %16, %17 : vector<16x128xf32>
    %c0_7 = arith.constant 0 : index
    %c0_8 = arith.constant 0 : index
    %19 = vector.load %arg6[%c0_7, %c0_8] : memref<16x128xf32, #tpu.memory_space<vmem>>, vector<16x128xf32>
    tpu.vector_store %arg6[%c0_7, %c0_8], %18 {strides = array<i32>} : memref<16x128xf32, #tpu.memory_space<vmem>>, vector<16x128xf32>,
    %c0_i32_9 = arith.constant 0 : i32
    %20 = arith.cmpi eq, %arg1, %c0_i32_9 : i32
    %21 = arith.extui %20 : i1 to i32
    %c0_i32_10 = arith.constant 0 : i32
    %22 = arith.cmpi ne, %21, %c0_i32_10 : i32
    scf.if %22 {
      %c0_11 = arith.constant 0 : index
      %c0_12 = arith.constant 0 : index
      %23 = vector.load %arg6[%c0_11, %c0_12] : memref<16x128xf32, #tpu.memory_space<vmem>>, vector<16x128xf32>
      %c0_13 = arith.constant 0 : index
      %c0_14 = arith.constant 0 : index
      %24 = vector.load %arg4[%c0_13, %c0_14] : memref<128x128xf32, #tpu.memory_space<vmem>>, vector<128x128xf32>
      %cst_15 = arith.constant dense<0.000000e+00> : vector<16x128xf32>
      %25 = tpu.matmul %23, %24, %cst_15 {dimension_numbers = #tpu.dot_dimension_numbers<[1], [0], [0], [1], [0, 0, 1, 1], [], []>} : vector<16x128xf32>, vector<128x128xf32>, vector<16x128xf32> -> vector<16x128xf32>
      %c0_16 = arith.constant 0 : index
      %c0_17 = arith.constant 0 : index
      %26 = vector.load %arg5[%c0_16, %c0_17] : memref<16x128xf32, #tpu.memory_space<vmem>>, vector<16x128xf32>
      tpu.vector_store %arg5[%c0_16, %c0_17], %25 {strides = array<i32>} : memref<16x128xf32, #tpu.memory_space<vmem>>, vector<16x128xf32>,
    } else {
    }
    return
  }
  func.func @transform_0(%arg0: i32, %arg1: i32) -> (i32, i32) {
    %c0_i32 = arith.constant 0 : i32
    return %arg0, %arg1 : i32, i32
  }
  func.func @transform_1(%arg0: i32, %arg1: i32) -> (i32, i32) {
    %c0_i32 = arith.constant 0 : i32
    %c0_i32_0 = arith.constant 0 : i32
    %c0_i32_1 = arith.constant 0 : i32
    return %c0_i32, %c0_i32_0 : i32, i32
  }
  func.func @transform_2(%arg0: i32, %arg1: i32) -> (i32, i32) {
    %c0_i32 = arith.constant 0 : i32
    %c0_i32_0 = arith.constant 0 : i32
    %c0_i32_1 = arith.constant 0 : i32
    return %c0_i32, %c0_i32_0 : i32, i32
  }
  func.func @transform_3(%arg0: i32, %arg1: i32) -> (i32, i32) {
    %c0_i32 = arith.constant 0 : i32
    %c0_i32_0 = arith.constant 0 : i32
    return %arg0, %c0_i32 : i32, i32
  }
}

</mosaic_0001>

<bundles_post_ra>
// kernel: gcn_conv_dgl.1
= control target key start
LH: loop header
LB: loop body
LE: loop exit
PB: predicated region body
PF: predicated region fallthrough
CT: control target
= control target key end

     0   :  { %8 = vsyncpa [#allocation4], 0  ;;  %s825_s0 = inlined_call_operand.vmem [shape: bf16[32,32], index: 0, kind: input, shape index: {}]   ;;  %s826_s1 = inlined_call_operand.vmem [shape: bf16[128,128], index: 1, kind: input, shape index: {}]   ;;  %s827_s2 = inlined_call_operand.vmem [shape: f32[128,128], index: 2, kind: input, shape index: {}]   ;;  %s828_s3 = inlined_call_operand.hbm [shape: f32[32,128], index: 3, kind: output, shape index: {}]  }
   0x1   :  { %10 = vsyncpa [#allocation4 + $0x1], 0  ;;  %s657_s12 = smov 0   ;;  %s659_s13 = smov 0  }
   0x2   :  { %s661_s14 = smov 0   ;;  %s663_s15 = smov 0  }
   0x3   :  { %s665_s16 = smov 0   ;;  %s667_s17 = smov 0  }
   0x4 LB: > { %s444_s18 = sadd.s32 4294967295, %s633_s17   ;;  %s445_s19 = sadd.s32 4294967294, %s633_s17   ;;  %s633_s17 = sphi %s667_s17, %s16_s17   ;;  %s629_s16 = sphi %s665_s16, %s835_s16   ;;  %s625_s15 = sphi %s663_s15, %s834_s15   ;;  %s621_s14 = sphi %s661_s14, %s833_s14   ;;  %s617_s13 = sphi %s659_s13, %s832_s13   ;;  %s613_s12 = sphi %s657_s12, %s831_s12  }
   0x5   : > { %s28_s20 = sadd.s32 1, %s629_s16  ;;  %s105_s21 = sadd.s32 1, %s621_s14 }
   0x6   : > { %p30_p0 = scmp.ge.s32.totalorder %s28_s20, 2  ;;  %p115_p1 = scmp.ne.s32.totalorder %s621_s14, %s617_s13 }
   0x7   : > { %p116_p2 = scmp.eq.s32.totalorder %s444_s18, 1  ;;  %p121_p3 = scmp.ne.s32.totalorder %s617_s13, %s613_s12 }
   0x8   : > { %s837_s20 = smov (%p30_p0, %s28_s20), 0  ;;  %p122_p5 = scmp.eq.s32.totalorder %s445_s19, 1 }
   0x9   : > { %p697_p4 = por %p116_p2, %p115_p1  ;;  %s102_s23 = ssub.s32 %s629_s16, %s837_s20 }
   0xa   : > { %p448_p6 = scmp.ge.s32.totalorder %s633_s17, 1  ;;  %p103_p7 = scmp.eq.s32.totalorder %s102_s23, 0 }
   0xb   : > { %p704_p8 = por %p122_p5, %p121_p3  ;;  %p158_p9 = scmp.lt.s32.totalorder %s633_s17, 3 }
   0xc   : > { %s710_s25 = scalar_select %p103_p7, %s621_s14, %s105_s21  }
   0xd   : > { %p159_p10 = pnand %p448_p6, %p158_p9 }
   0xe   : > { %s450_s30 = sshll.u32 (!%p159_p10), %s625_s15, 1  ;;  %s182_s28 = sand.u32 (!%p159_p10), 1, %s617_s13  }
   0xf   : > { %162 = sbr.rel (%p159_p10) target bundleno = 316 (0x13c), region = 32  ;;  %p186_p11 = scmp.lt.s32.totalorder (!%p159_p10), %s450_s30, 3 }
  0x10   : > { %s449_s29 = sshll.u32 (!%p159_p10), %s182_s28, 4  ;;  %s497_s4 = sshll.u32 (!%p159_p10), %s625_s15, 4 }
  0x11   : > { %s365_s7 = scalar_lea.hbm (!%p159_p10), %s828_s3, %s497_s4  ;;  %s184_s8 = scalar_lea.vmem (!%p159_p10), [#allocation3], %s449_s29 }
  0x12   : > { %s366_s9 = sshll.u32 (!%p159_p10), %s184_s8, 4  ;;  %s368_s10 = sshll.u32 (!%p159_p10), %s365_s7, 4  ;;  %s367_s9 = int_to_ptr.vmem [resolvable:$true] %s366_s9  ;;  %s369_s10 = int_to_ptr.hbm [resolvable:$true] %s368_s10 }
  0x13   : > { %s354_s11 = scalar_lea.sflag (!%p159_p10), [#allocation4], %s182_s28  ;;  %s569_s18 = sshra.s32 (!%p159_p10), %s369_s10, 4  ;;  %s570_s18 = int_to_ptr.hbm [resolvable:$true] %s569_s18 }
  0x14   : > { %v496_v0 = vld [vmem:[%s826_s1 + $0x38] sm:$0xff]  ;;  %v495_v1 = vld [vmem:[%s826_s1 + $0x30] sm:$0xff]  ;;  %v325_v4 = vld [vmem:[%s827_s2 + $0x68] sm:$0xff]  ;;  %v204_v7 = vlaneseq  ;;  %s839_s30 = smov (!%p186_p11, %s450_s30), 3  ;;  %s575_s23 = scalar_lea.hbm %s828_s3, 32 }
  0x15   : > { %289 = vmatpush.bf16.msra.mxu0 %v496_v0  ;;  %v327_v2 = vld [vmem:[%s827_s2 + $0x78] sm:$0xff]  ;;  %v326_v3 = vld [vmem:[%s827_s2 + $0x70] sm:$0xff]  ;;  %v494_v5 = vld [vmem:[%s826_s1 + $0x28] sm:$0xff]  ;;  %s451_s6 = sshll.u32 %s839_s30, 2  ;;  %p576_p1 = scmp.lt.s32.totalorder %s570_s18, %s828_s3 }
  0x16   : > { %328 = vmatpush.msra.mxu1 %v327_v2  ;;  %v324_v6 = vld [vmem:[%s827_s2 + $0x60] sm:$0xff]  ;;  %v323_v8 = vld [vmem:[%s827_s2 + $0x58] sm:$0xff]  ;;  %v322_v10 = vld [vmem:[%s827_s2 + $0x50] sm:$0xff]  ;;  %v205_v11 = vand.u32 127, %v204_v7  ;;  %s192_s19 = scalar_lea.vmem %s825_s0, %s451_s6 }
  0x17   : > { %v493_v9 = vld [vmem:[%s826_s1 + $0x20] sm:$0xff]  ;;  %v321_v12 = vld [vmem:[%s827_s2 + $0x48] sm:$0xff]  ;;  %v492_v13 = vld [vmem:[%s826_s1 + $0x18] sm:$0xff] }
  0x18   : > { %329 = vmatpush.msra.mxu1 %v326_v3  ;;  %v320_v14 = vld [vmem:[%s827_s2 + $0x40] sm:$0xff]  ;;  %vm209_vm0 = vcmp.lt.s32.totalorder %v205_v11, 32  ;;  %v319_v15 = vld [vmem:[%s827_s2 + $0x38] sm:$0xff]  ;;  %v491_v16 = vld [vmem:[%s826_s1 + $0x10] sm:$0xff] }
  0x19   : > { %290 = vmatpush.bf16.msra.mxu0 %v495_v1  ;;  %v318_v17 = vld [vmem:[%s827_s2 + $0x30] sm:$0xff]  ;;  %v202_v18 = vld [vmem:[%s192_s19] sm:$0xf]  ;;  %v203_v19 = vld [vmem:[%s192_s19 + $0x4] sm:$0xf]  ;;  %s571_s19 = scalar_lea.hbm %s570_s18, 16 }
  0x1a   : > { %330 = vmatpush.msra.mxu1 %v325_v4  ;;  %vm210_vm1 = vmpackc.low %vm209_vm0, %vm209_vm0  ;;  %v317_v20 = vld [vmem:[%s827_s2 + $0x28] sm:$0xff]  ;;  %v316_v24 = vld [vmem:[%s827_s2 + $0x20] sm:$0xff]  ;;  %p572_p12 = scmp.ne.s32.totalorder %s570_s18, %s571_s19  ;;  %p577_p2 = scmp.lt.s32.totalorder %s575_s23, %s571_s19 }
  0x1b   : > { %v490_v21 = vld [vmem:[%s826_s1 + $0x8] sm:$0xff]  ;;  %v211_v22 = vsel %vm210_vm1, %v202_v18, 0  ;;  %v212_v23 = vsel %vm210_vm1, %v203_v19, 0  ;;  %v315_v25 = vld [vmem:[%s827_s2 + $0x18] sm:$0xff]  ;;  %v489_v28 = vld [vmem:[%s826_s1] sm:$0xff] }
  0x1c   : > { %331 = vmatpush.msra.mxu1 %v324_v6  ;;  %v237_v26 = vunpack.c.l.b16 %v211_v22  ;;  %v238_v27 = vunpack.c.l.b16 %v212_v23  ;;  %v314_v29 = vld [vmem:[%s827_s2 + $0x10] sm:$0xff]  ;;  %v313_v30 = vld [vmem:[%s827_s2 + $0x8] sm:$0xff]  ;;  %v312_v32 = vld [vmem:[%s827_s2] sm:$0xff]  ;;  %p573_p13 = pnand %p572_p12, %p697_p4  ;;  %p578_p3 = por %p577_p2, %p576_p1 }
  0x1d   : > { %291 = vmatpush.bf16.msra.mxu0 %v494_v5 }
  0x1e   : > { %332 = vmatpush.msra.mxu1 %v323_v8  ;;  %v239_v31 = vpack.c.b16 %v238_v27, %v237_v26  ;;  %p574_p0 = pneg %p573_p13 }
  0x20   : > { %333 = vmatpush.msra.mxu1 %v322_v10  ;;  %p579_p5 = pnand %p578_p3, %p574_p0 }
  0x21   : > { %292 = vmatpush.bf16.msra.mxu0 %v493_v9 }
  0x22   : > { %334 = vmatpush.msra.mxu1 %v321_v12 }
  0x24   : > { %335 = vmatpush.msra.mxu1 %v320_v14 }
  0x25   : > { %293 = vmatpush.bf16.msra.mxu0 %v492_v13 }
  0x26   : > { %336 = vmatpush.msra.mxu1 %v319_v15 }
  0x28   : > { %337 = vmatpush.msra.mxu1 %v318_v17 }
  0x29   : > { %294 = vmatpush.bf16.msra.mxu0 %v491_v16 }
  0x2a   : > { %338 = vmatpush.msra.mxu1 %v317_v20 }
  0x2c   : > { %339 = vmatpush.msra.mxu1 %v316_v24 }
  0x2d   : > { %295 = vmatpush.bf16.msra.mxu0 %v490_v21 }
  0x2e   : > { %340 = vmatpush.msra.mxu1 %v315_v25 }
  0x30   : > { %341 = vmatpush.msra.mxu1 %v314_v29 }
  0x31   : > { %296 = vmatpush.bf16.msra.mxu0 %v489_v28 }
  0x32   : > { %342 = vmatpush.msra.mxu1 %v313_v30 }
  0x34   : > { %297 = vmatmul.bf16.vlgmr.msra.gmra.mxu0 %v239_v31  ;;  %343 = vmatpush.msra.mxu1 %v312_v32 }
  0xb1   : > { %v298_v33 = vpop.f32.mrf.mxu0 }
  0xb2   : > { %344 = vmatmul.f32.vlgmr.msra.gmra.mxu1 %v298_v33 }
  0xb9   : > { %v300_v34 = vpop.f32.mrf.mxu0 }
  0xba   : > { %347 = vmatmul.f32.gmra.mxu1 %v300_v34 }
 0x12f   : > { %v345_v35 = vpop.f32.mrf.mxu1 }
 0x130   : > { %351 = vst [vmem:[%s184_s8] sm:$0xff] %v345_v35 }
 0x137   : > { %v348_v36 = vpop.f32.mrf.mxu1 }
 0x138   : > { %352 = vst [vmem:[%s184_s8 + $0x8] sm:$0xff] %v348_v36 }
 0x139   : > { %582 = shalt.err (!%p579_p5)
}
 0x13a   : > { %s635_s27 = smov 128   ;;  %s636_s28 = smov 8  }
 0x13b   : > { %498 = dma.vmem_to_hbm [thread:$0]  (%p697_p4), %s367_s9, 256, %s369_s10, %s354_s11, %s635_s27, %s635_s27, %s636_s28  }
 0x13c PF: > { %p504_p6 = scmp.ge.s32.totalorder %s633_s17, 2  ;;  %s383_s29 = sand.u32 1, %s613_s12  }
 0x13d   : > { %s384_s4 = scalar_lea.sflag [#allocation4], %s383_s29 }
 0x13e   : > { %p501_p7 = pnand %p504_p6, %p704_p8 }
 0x140   : > { %p502_p9 = pneg %p501_p7 }
 0x142   : > { %608 = dma.done.wait (%p502_p9), %s384_s4, 256  }
 0x143   : > { %610 = vsyncadd (%p502_p9), %s384_s4, 4294967040  ;;  %s16_s17 = sadd.s32 1, %s633_s17   ;;  %s831_s12 = smov %s617_s13 }
 0x144   : > { %p13_p10 = scmp.ge.s32.totalorder %s16_s17, 4   ;;  %s832_s13 = smov %s621_s14 }
 0x145   : > { %s833_s14 = smov %s710_s25  ;;  %s834_s15 = smov %s629_s16 }
 0x146   : > { %s835_s16 = smov %s837_s20  ;;  %15 = sbr.rel (!%p13_p10) target bundleno = 4 (0x4), region = 76 }
 0x14b   :  { %390 = vsyncpa [#allocation4], 1 }
 0x14c   :  { %392 = vsyncpa [#allocation4 + $0x1], 1 }

</bundles_post_ra>
